<compile_context>
chip_gen: v7x
topology: tpu7x:2x2x1
jax: 0.10.0
libtpu: 0.0.40
codegen_flags: <defaults>
</compile_context>

<pallas_src>
import jax
import jax.numpy as jnp
from jax.experimental import pallas as pl
from jax.experimental.pallas import tpu as pltpu


_LANE = 128                       # lane width: block last-dim multiple (or full extent)
_BLOCK_BYTES_TARGET = 8 << 20     # ~8 MiB per input buffer (in-range for v5e/v6e/v7x)
_MAX_UNCHUNKED_HW = 4096          # use full-extent chunk (no masking) up to this many lanes
_MIN_HW_FOR_PALLAS = 256          # tiny levels are pooled in XLA, fused with the concat


# ----------------------------------------------------------------------------
# Hardware queries (defensive: conservative fallbacks if unavailable).
# ----------------------------------------------------------------------------
def _vmem_capacity_bytes() -> int:
    try:
        info = pltpu.get_tpu_info()
        v = getattr(info, "vmem_capacity_bytes", None)
        if isinstance(v, int) and v > 0:
            return v
    except Exception:
        pass
    return 64 << 20  # conservative: v7x per-TensorCore VMEM


def _num_tensorcores() -> int:
    try:
        info = pltpu.get_tpu_info()
        for attr in ("num_cores", "num_tensorcores", "tensorcore_count", "cores_per_chip"):
            v = getattr(info, attr, None)
            if isinstance(v, int) and v >= 1:
                return v
    except Exception:
        pass
    try:
        v = getattr(jax.devices()[0], "num_cores", None)
        if isinstance(v, int) and v >= 1:
            return v
    except Exception:
        pass
    return 1  # safe default: no channel split (correct on v5e/v6e, merely unsplit on v7x)


# ----------------------------------------------------------------------------
# Tile planning.
# ----------------------------------------------------------------------------
def _largest_divisor_at_most(n: int, m: int) -> int:
    m = max(1, min(n, m))
    for d in range(m, 0, -1):
        if n % d == 0:
            return d
    return 1


def _plan_tiles(B: int, C: int, hw: int, itemsize: int):
    """Returns (b_tile, c_tile, chunk) for the (B, C, HW) streaming reduce."""
    target = _BLOCK_BYTES_TARGET
    n_cores = _num_tensorcores()

    # Channel tiling only to feed megacore sharding (>= 2 TCs) and only if each
    # core's block stays lane-dense; never split on single-TC chips.
    c_tile = C
    if n_cores >= 2 and C % n_cores == 0 and (C // n_cores) % _LANE == 0:
        c_tile = C // n_cores

    # Spatial chunk: prefer the full HW extent (no masking at all) when modest
    # and within budget at b_tile=1; otherwise a lane-dense chunk from budget.
    full_ok = hw <= _MAX_UNCHUNKED_HW and c_tile * hw * itemsize <= target
    if full_ok or hw < 2 * _LANE:
        chunk = hw
    else:
        budget_elems = max(_LANE, target // max(1, c_tile * itemsize))
        chunk = max(_LANE, min((hw // _LANE) * _LANE, (budget_elems // _LANE) * _LANE))

    # Batch tiling: largest divisor of B whose block fits the per-buffer budget
    # (guards large B on v7x's 64 MiB VMEM).
    max_b = max(1, target // max(1, c_tile * chunk * itemsize))
    b_tile = _largest_divisor_at_most(B, max_b)

    return b_tile, c_tile, chunk


# ----------------------------------------------------------------------------
# Kernel.
# ----------------------------------------------------------------------------
def _lowest_value(dtype):
    if jnp.issubdtype(dtype, jnp.floating):
        return jnp.array(-jnp.inf, dtype)
    return jnp.array(jnp.iinfo(dtype).min, dtype)


def _make_pool_kernel(hw: int, chunk: int, use_avg: bool, use_max: bool):
    n_chunks = (hw + chunk - 1) // chunk
    rem = hw - (n_chunks - 1) * chunk          # valid lanes in the last chunk
    need_mask = rem != chunk
    inv_hw = 1.0 / float(hw)

    def kernel(x_ref, o_ref, sum_ref, max_ref):
        k = pl.program_id(2)
        nk = pl.num_programs(2)

        @pl.when(k == 0)
        def _init():
            if use_avg:
                sum_ref[...] = jnp.zeros_like(sum_ref)
            if use_max:
                max_ref[...] = jnp.full_like(max_ref, -jnp.inf)

        def accumulate(x, valid):
            # x: (b_tile, c_tile, chunk) in the input dtype (no full f32 copy).
            if use_avg:
                xs = x if valid is None else jnp.where(valid, x, jnp.zeros((), x.dtype))
                sum_ref[...] += jnp.sum(xs, axis=-1, dtype=jnp.float32)
            if use_max:
                xm = x if valid is None else jnp.where(valid, x, _lowest_value(x.dtype))
                max_ref[...] = jnp.maximum(
                    max_ref[...], jnp.max(xm, axis=-1).astype(jnp.float32))

        if need_mask:
            # Common path: full chunks, no iota / select / extra VMEM temps.
            @pl.when(k < nk - 1)
            def _full():
                accumulate(x_ref[...], None)

            # Only the last chunk pays the mask; mask from a (1,1,chunk) iota.
            @pl.when(k == nk - 1)
            def _last():
                lane = jax.lax.broadcasted_iota(jnp.int32, (1, 1, chunk), 2)
                accumulate(x_ref[...], lane < rem)
        else:
            accumulate(x_ref[...], None)

        @pl.when(k == nk - 1)
        def _finalize():
            idx = 0
            if use_avg:
                avg = sum_ref[...] * jnp.float32(inv_hw)
                o_ref[:, idx:idx + 1, :] = avg[:, None, :].astype(o_ref.dtype)
                idx += 1
            if use_max:
                o_ref[:, idx:idx + 1, :] = max_ref[...][:, None, :].astype(o_ref.dtype)

    return kernel


# ----------------------------------------------------------------------------
# Per-level wrappers.
# ----------------------------------------------------------------------------
def _pool_one_level_pallas(x_nchw: jax.Array, use_avg: bool, use_max: bool) -> jax.Array:
    """x_nchw: (B, C, H, W) -> (B, n_out*C), ordered [avg | max]."""
    B, C, H, W = x_nchw.shape
    hw = H * W
    x = x_nchw.reshape(B, C, hw)               # contiguous glue reshape in plain JAX
    itemsize = jnp.dtype(x.dtype).itemsize
    n_out = int(use_avg) + int(use_max)

    b_tile, c_tile, chunk = _plan_tiles(B, C, hw, itemsize)
    n_b = B // b_tile
    n_c = C // c_tile
    n_k = (hw + chunk - 1) // chunk

    # Hard VMEM budget check (double-buffered input + output + f32 scratch).
    cap = _vmem_capacity_bytes()
    in_block_bytes = b_tile * c_tile * chunk * itemsize
    out_block_bytes = b_tile * n_out * c_tile * itemsize
    scratch_bytes = 2 * b_tile * c_tile * 4
    vmem_need = 2 * in_block_bytes + 2 * out_block_bytes + scratch_bytes
    if vmem_need + (2 << 20) > cap:
        raise ValueError(
            f"ConcatPooling tile plan needs ~{vmem_need} B of VMEM but only "
            f"{cap} B available; shrink the block-bytes target.")
    vmem_limit = int(min(cap, vmem_need + (8 << 20)))

    kernel = _make_pool_kernel(hw, chunk, use_avg, use_max)

    out = pl.pallas_call(
        kernel,
        out_shape=jax.ShapeDtypeStruct((B, n_out, C), x.dtype),
        grid_spec=pltpu.PrefetchScalarGridSpec(
            num_scalar_prefetch=0,
            grid=(n_b, n_c, n_k),
            in_specs=[pl.BlockSpec((b_tile, c_tile, chunk),
                                   lambda b, c, k: (b, c, k))],
            out_specs=pl.BlockSpec((b_tile, n_out, c_tile),
                                   lambda b, c, k: (b, 0, c)),
            scratch_shapes=[
                pltpu.VMEM((b_tile, c_tile), jnp.float32),   # running sum
                pltpu.VMEM((b_tile, c_tile), jnp.float32),   # running max
            ],
        ),
        compiler_params=pltpu.CompilerParams(
            dimension_semantics=("parallel", "parallel", "arbitrary"),
            vmem_limit_bytes=vmem_limit,
        ),
    )(x)
    return out.reshape(B, n_out * C)


def _pool_small_level_xla(x_nchw: jax.Array, use_avg: bool, use_max: bool) -> jax.Array:
    """Tiny levels: plain jnp pooling, fused by XLA with the final concat."""
    B, C = x_nchw.shape[:2]
    xf = x_nchw.reshape(B, C, -1)
    feats = []
    if use_avg:
        feats.append(jnp.mean(xf.astype(jnp.float32), axis=-1).astype(x_nchw.dtype))
    if use_max:
        feats.append(jnp.max(xf, axis=-1))
    return jnp.concatenate(feats, axis=-1)


def concat_pooling_forward(features: dict, use_avg: bool = True,
                           use_max: bool = True) -> jax.Array:
    """Mirror of ConcatPooling.forward for a dict of NCHW feature maps."""
    assert use_avg or use_max, "Either max or avg pooling should be on"
    pooled = []
    for key in features:
        x = features[key]
        H, W = x.shape[2], x.shape[3]
        if H * W >= _MIN_HW_FOR_PALLAS:
            pooled.append(_pool_one_level_pallas(x, use_avg, use_max))
        else:
            pooled.append(_pool_small_level_xla(x, use_avg, use_max))
    return jnp.concatenate(pooled, axis=-1)


# ----------------------------------------------------------------------------
# Pure-JAX reference and self-test.
# ----------------------------------------------------------------------------
def _reference(features: dict, use_avg: bool = True, use_max: bool = True) -> jax.Array:
    outs = []
    for key in features:
        x = features[key].astype(jnp.float32)
        feats = []
        if use_avg:
            feats.append(jnp.mean(x, axis=(2, 3)))
        if use_max:
            feats.append(jnp.max(x, axis=(2, 3)))
        outs.append(jnp.concatenate(feats, axis=-1))
    ref_dtype = features[next(iter(features))].dtype
    return jnp.concatenate(outs, axis=-1).astype(ref_dtype)


if __name__ == "__main__":
    key = jax.random.PRNGKey(0)
    B, C = 2, 4
    # 5 FPN levels:
    #   72x72 (HW=5184): chunked pipelined path with masked last chunk,
    #   32x32 / 16x16  : single full-extent chunk, no masking,
    #   8x8   / 4x4    : tiny levels pooled in XLA, fused with the concat.
    spatial = [72, 32, 16, 8, 4]
    features = {}
    for lvl, s in enumerate(spatial):
        key, sub = jax.random.split(key)
        features[f"p{lvl + 2}"] = jax.random.normal(
            sub, (B, C, s, s), dtype=jnp.float32)

    out = jax.block_until_ready(
        concat_pooling_forward(features, use_avg=True, use_max=True))
    ref = _reference(features, use_avg=True, use_max=True)
    assert out.shape == (B, 2 * C * len(spatial)), out.shape
    assert jnp.allclose(out, ref, atol=1e-5, rtol=1e-5), "mismatch vs reference (avg+max)"

    # avg-only path exercises the use_avg / use_max flag handling.
    out_avg = jax.block_until_ready(
        concat_pooling_forward(features, use_avg=True, use_max=False))
    ref_avg = _reference(features, use_avg=True, use_max=False)
    assert out_avg.shape == (B, C * len(spatial)), out_avg.shape
    assert jnp.allclose(out_avg, ref_avg, atol=1e-5, rtol=1e-5), "mismatch vs reference (avg)"

    print("KERNEL_OK")
</pallas_src>

<mosaic_0001>
module attributes {stable_mosaic.version = 11 : i64} {
  func.func @kernel(%arg0: i32, %arg1: i32, %arg2: i32, %arg3: memref<2x4x5120xf32, #tpu.memory_space<vmem>>, %arg4: memref<2x2x4xf32, #tpu.memory_space<vmem>>, %arg5: memref<2x4xf32, #tpu.memory_space<vmem>>, %arg6: memref<2x4xf32, #tpu.memory_space<vmem>>) attributes {dimension_semantics = [#tpu.dimension_semantics<parallel>, #tpu.dimension_semantics<parallel>, #tpu.dimension_semantics<arbitrary>], iteration_bounds = array<i64: 1, 1, 2>, scalar_prefetch = 0 : i64, scratch_operands = 2 : i64, tpu.core_type = #tpu.core_type<tc>, window_params = [{transform_indices = @transform_0, window_bounds = array<i64: 2, 4, 5120>}, {transform_indices = @transform_1, window_bounds = array<i64: 2, 2, 4>}]} {
    %c0_i32 = arith.constant 0 : i32
    %0 = arith.cmpi eq, %arg2, %c0_i32 : i32
    %1 = arith.extui %0 : i1 to i32
    %c0_i32_0 = arith.constant 0 : i32
    %2 = arith.cmpi ne, %1, %c0_i32_0 : i32
    scf.if %2 {
      %cst = arith.constant 0.000000e+00 : f32
      %12 = vector.broadcast %cst : f32 to vector<2x4xf32>
      %c0 = arith.constant 0 : index
      %c0_6 = arith.constant 0 : index
      %13 = vector.load %arg5[%c0, %c0_6] : memref<2x4xf32, #tpu.memory_space<vmem>>, vector<2x4xf32>
      tpu.vector_store %arg5[%c0, %c0_6], %12 {strides = array<i32>} : memref<2x4xf32, #tpu.memory_space<vmem>>, vector<2x4xf32>,
      %cst_7 = arith.constant 0xFF800000 : f32
      %14 = vector.broadcast %cst_7 : f32 to vector<2x4xf32>
      %c0_8 = arith.constant 0 : index
      %c0_9 = arith.constant 0 : index
      %15 = vector.load %arg6[%c0_8, %c0_9] : memref<2x4xf32, #tpu.memory_space<vmem>>, vector<2x4xf32>
      tpu.vector_store %arg6[%c0_8, %c0_9], %14 {strides = array<i32>} : memref<2x4xf32, #tpu.memory_space<vmem>>, vector<2x4xf32>,
    } else {
    }
    %c1_i32 = arith.constant 1 : i32
    %3 = arith.cmpi slt, %arg2, %c1_i32 : i32
    %4 = arith.extui %3 : i1 to i32
    %c0_i32_1 = arith.constant 0 : i32
    %5 = arith.cmpi ne, %4, %c0_i32_1 : i32
    scf.if %5 {
      %c0 = arith.constant 0 : index
      %c0_6 = arith.constant 0 : index
      %c0_7 = arith.constant 0 : index
      %12 = vector.load %arg3[%c0, %c0_6, %c0_7] : memref<2x4x5120xf32, #tpu.memory_space<vmem>>, vector<2x4x5120xf32>
      %c0_8 = arith.constant 0 : index
      %c0_9 = arith.constant 0 : index
      %13 = vector.load %arg5[%c0_8, %c0_9] : memref<2x4xf32, #tpu.memory_space<vmem>>, vector<2x4xf32>
      %cst = arith.constant dense<0.000000e+00> : vector<2x4xf32>
      %14 = vector.multi_reduction <add>, %12, %cst [2] : vector<2x4x5120xf32> to vector<2x4xf32>
      %15 = arith.addf %13, %14 : vector<2x4xf32>
      %c0_10 = arith.constant 0 : index
      %c0_11 = arith.constant 0 : index
      %16 = vector.load %arg5[%c0_10, %c0_11] : memref<2x4xf32, #tpu.memory_space<vmem>>, vector<2x4xf32>
      tpu.vector_store %arg5[%c0_10, %c0_11], %15 {strides = array<i32>} : memref<2x4xf32, #tpu.memory_space<vmem>>, vector<2x4xf32>,
      %c0_12 = arith.constant 0 : index
      %c0_13 = arith.constant 0 : index
      %17 = vector.load %arg6[%c0_12, %c0_13] : memref<2x4xf32, #tpu.memory_space<vmem>>, vector<2x4xf32>
      %cst_14 = arith.constant dense<0xFF800000> : vector<2x4xf32>
      %18 = vector.multi_reduction <maximumf>, %12, %cst_14 [2] : vector<2x4x5120xf32> to vector<2x4xf32>
      %19 = arith.maximumf %17, %18 : vector<2x4xf32>
      %c0_15 = arith.constant 0 : index
      %c0_16 = arith.constant 0 : index
      %20 = vector.load %arg6[%c0_15, %c0_16] : memref<2x4xf32, #tpu.memory_space<vmem>>, vector<2x4xf32>
      tpu.vector_store %arg6[%c0_15, %c0_16], %19 {strides = array<i32>} : memref<2x4xf32, #tpu.memory_space<vmem>>, vector<2x4xf32>,
    } else {
    }
    %c1_i32_2 = arith.constant 1 : i32
    %6 = arith.cmpi eq, %arg2, %c1_i32_2 : i32
    %7 = arith.extui %6 : i1 to i32
    %c0_i32_3 = arith.constant 0 : i32
    %8 = arith.cmpi ne, %7, %c0_i32_3 : i32
    scf.if %8 {
      %12 = tpu.iota {dimensions = array<i32: 2>} : vector<1x1x5120xi32>
      %c0 = arith.constant 0 : index
      %c0_6 = arith.constant 0 : index
      %c0_7 = arith.constant 0 : index
      %13 = vector.load %arg3[%c0, %c0_6, %c0_7] : memref<2x4x5120xf32, #tpu.memory_space<vmem>>, vector<2x4x5120xf32>
      %c64_i32 = arith.constant 64 : i32
      %14 = vector.broadcast %c64_i32 : i32 to vector<1x1x5120xi32>
      %15 = arith.cmpi slt, %12, %14 : vector<1x1x5120xi32>
      %cst = arith.constant 0.000000e+00 : f32
      %16 = vector.shape_cast %15 : vector<1x1x5120xi1> to vector<1x1x5120xi1>
      %17 = vector.broadcast %16 : vector<1x1x5120xi1> to vector<2x4x5120xi1>
      %18 = vector.broadcast %cst : f32 to vector<2x4x5120xf32>
      %19 = arith.select %17, %13, %18 : vector<2x4x5120xi1>, vector<2x4x5120xf32>
      %c0_8 = arith.constant 0 : index
      %c0_9 = arith.constant 0 : index
      %20 = vector.load %arg5[%c0_8, %c0_9] : memref<2x4xf32, #tpu.memory_space<vmem>>, vector<2x4xf32>
      %cst_10 = arith.constant dense<0.000000e+00> : vector<2x4xf32>
      %21 = vector.multi_reduction <add>, %19, %cst_10 [2] : vector<2x4x5120xf32> to vector<2x4xf32>
      %22 = arith.addf %20, %21 : vector<2x4xf32>
      %c0_11 = arith.constant 0 : index
      %c0_12 = arith.constant 0 : index
      %23 = vector.load %arg5[%c0_11, %c0_12] : memref<2x4xf32, #tpu.memory_space<vmem>>, vector<2x4xf32>
      tpu.vector_store %arg5[%c0_11, %c0_12], %22 {strides = array<i32>} : memref<2x4xf32, #tpu.memory_space<vmem>>, vector<2x4xf32>,
      %cst_13 = arith.constant 0xFF800000 : f32
      %24 = vector.shape_cast %15 : vector<1x1x5120xi1> to vector<1x1x5120xi1>
      %25 = vector.broadcast %24 : vector<1x1x5120xi1> to vector<2x4x5120xi1>
      %26 = vector.broadcast %cst_13 : f32 to vector<2x4x5120xf32>
      %27 = arith.select %25, %13, %26 : vector<2x4x5120xi1>, vector<2x4x5120xf32>
      %c0_14 = arith.constant 0 : index
      %c0_15 = arith.constant 0 : index
      %28 = vector.load %arg6[%c0_14, %c0_15] : memref<2x4xf32, #tpu.memory_space<vmem>>, vector<2x4xf32>
      %cst_16 = arith.constant dense<0xFF800000> : vector<2x4xf32>
      %29 = vector.multi_reduction <maximumf>, %27, %cst_16 [2] : vector<2x4x5120xf32> to vector<2x4xf32>
      %30 = arith.maximumf %28, %29 : vector<2x4xf32>
      %c0_17 = arith.constant 0 : index
      %c0_18 = arith.constant 0 : index
      %31 = vector.load %arg6[%c0_17, %c0_18] : memref<2x4xf32, #tpu.memory_space<vmem>>, vector<2x4xf32>
      tpu.vector_store %arg6[%c0_17, %c0_18], %30 {strides = array<i32>} : memref<2x4xf32, #tpu.memory_space<vmem>>, vector<2x4xf32>,
    } else {
    }
    %c1_i32_4 = arith.constant 1 : i32
    %9 = arith.cmpi eq, %arg2, %c1_i32_4 : i32
    %10 = arith.extui %9 : i1 to i32
    %c0_i32_5 = arith.constant 0 : i32
    %11 = arith.cmpi ne, %10, %c0_i32_5 : i32
    scf.if %11 {
      %c0 = arith.constant 0 : index
      %c0_6 = arith.constant 0 : index
      %12 = vector.load %arg5[%c0, %c0_6] : memref<2x4xf32, #tpu.memory_space<vmem>>, vector<2x4xf32>
      %cst = arith.constant 1.92901236E-4 : f32
      %13 = vector.broadcast %cst : f32 to vector<2x4xf32>
      %14 = arith.mulf %12, %13 : vector<2x4xf32>
      %15 = vector.shape_cast %14 : vector<2x4xf32> to vector<2x1x4xf32>
      %c0_7 = arith.constant 0 : index
      %c0_8 = arith.constant 0 : index
      %c0_9 = arith.constant 0 : index
      %16 = vector.load %arg4[%c0_7, %c0_8, %c0_9] : memref<2x2x4xf32, #tpu.memory_space<vmem>>, vector<2x1x4xf32>
      tpu.vector_store %arg4[%c0_7, %c0_8, %c0_9], %15 {strides = array<i32>} : memref<2x2x4xf32, #tpu.memory_space<vmem>>, vector<2x1x4xf32>,
      %c0_10 = arith.constant 0 : index
      %c0_11 = arith.constant 0 : index
      %17 = vector.load %arg6[%c0_10, %c0_11] : memref<2x4xf32, #tpu.memory_space<vmem>>, vector<2x4xf32>
      %18 = vector.shape_cast %17 : vector<2x4xf32> to vector<2x1x4xf32>
      %c0_12 = arith.constant 0 : index
      %c1 = arith.constant 1 : index
      %c0_13 = arith.constant 0 : index
      %19 = vector.load %arg4[%c0_12, %c1, %c0_13] : memref<2x2x4xf32, #tpu.memory_space<vmem>>, vector<2x1x4xf32>
      tpu.vector_store %arg4[%c0_12, %c1, %c0_13], %18 {strides = array<i32>} : memref<2x2x4xf32, #tpu.memory_space<vmem>>, vector<2x1x4xf32>,
    } else {
    }
    return
  }
  func.func @transform_0(%arg0: i32, %arg1: i32, %arg2: i32) -> (i32, i32, i32) {
    %c0_i32 = arith.constant 0 : i32
    return %arg0, %arg1, %arg2 : i32, i32, i32
  }
  func.func @transform_1(%arg0: i32, %arg1: i32, %arg2: i32) -> (i32, i32, i32) {
    %c0_i32 = arith.constant 0 : i32
    %c0_i32_0 = arith.constant 0 : i32
    return %arg0, %c0_i32, %arg1 : i32, i32, i32
  }
}

</mosaic_0001>

<bundles_post_ra>
// kernel: tpu_custom_call.1
= control target key start
LH: loop header
LB: loop body
LE: loop exit
PB: predicated region body
PF: predicated region fallthrough
CT: control target
= control target key end

     0   :  { %6 = vsyncpa [#allocation5], 0  ;;  %s2648_s0 = inlined_call_operand.hbm [shape: f32[2,4,5184], index: 0, kind: input, shape index: {}]   ;;  %s2649_s1 = inlined_call_operand.hbm [shape: f32[2,2,4], index: 1, kind: output, shape index: {}]  }
   0x1   :  { %8 = vsyncpa [#allocation5 + $0x1], 0 }
   0x2   :  { %9 = vsyncpa [#allocation6], 0  ;;  %s1941_s6 = smov 0   ;;  %s1943_s7 = smov 0  }
   0x3   :  { %s1945_s8 = smov 0   ;;  %s1947_s9 = smov 0  }
   0x4   :  { %s1949_s10 = smov 0   ;;  %s1951_s11 = smov 0  }
   0x5 LB: > { %s1686_s12 = sadd.s32 4294967295, %s1920_s11   ;;  %s27_s13 = sadd.s32 1, %s1916_s10  ;;  %s1920_s11 = sphi %s1951_s11, %s15_s11   ;;  %s1916_s10 = sphi %s1949_s10, %s2656_s10   ;;  %s1912_s9 = sphi %s1947_s9, %s2655_s9   ;;  %s1908_s8 = sphi %s1945_s8, %s2654_s8   ;;  %s1904_s7 = sphi %s1943_s7, %s2653_s7   ;;  %s1900_s6 = sphi %s1941_s6, %s2652_s6  }
   0x6   : > { %p28_p0 = scmp.ge.s32.totalorder %s27_s13, 2  ;;  %s45_s14 = sadd.s32 1, %s1908_s8 }
   0x7   : > { %p52_p1 = scmp.ne.s32.totalorder %s1908_s8, %s1904_s7  ;;  %p53_p2 = scmp.eq.s32.totalorder %s1920_s11, 0 }
   0x8   : > { %s2658_s13 = smov (%p28_p0, %s27_s13), 0  ;;  %p58_p4 = scmp.ne.s32.totalorder %s1904_s7, %s1900_s6 }
   0x9   : > { %p54_p3 = por %p53_p2, %p52_p1  ;;  %s41_s15 = ssub.s32 %s1916_s10, %s2658_s13 }
   0xa   : > { %p59_p5 = scmp.eq.s32.totalorder %s1686_s12, 0  ;;  %p43_p6 = scmp.eq.s32.totalorder %s41_s15, 0 }
   0xb   : > { %p1688_p8 = scmp.ge.s32.totalorder %s1920_s11, 2 }
   0xc   : > { %p1982_p7 = por %p59_p5, %p58_p4 }
   0xd   : > { %s1987_s17 = scalar_select %p43_p6, %s1908_s8, %s45_s14  }
   0xe   : > { %106 = sbr.rel (%p1688_p8) target bundleno = 56 (0x38), region = 16 }
  0x15   : > { %109 = sbr.rel (!%p54_p3) target bundleno = 56 (0x38), region = 20  ;;  %s110_s18 = sand.u32 (%p54_p3), 1, %s1908_s8  }
  0x16   : > { %s116_s19 = smul.u32 (%p54_p3), 40, %s1916_s10  ;;  %s1998_s24 = scalar_lea.sflag (%p54_p3), [#allocation5], %s110_s18 }
  0x17   : > { %s1707_s20 = smul.u32 (%p54_p3), 320, %s110_s18 }
  0x18   : > { %s117_s21 = ssub.s32 (%p54_p3), 41, %s116_s19 }
  0x19   : > { %p118_p9 = scmp.lt.s32.totalorder (%p54_p3), %s117_s21, 40  ;;  %s114_s25 = scalar_lea.vmem (%p54_p3), [#allocation4], %s1707_s20 }
  0x1c   : > { %s2660_s21 = smov (!%p118_p9, %s117_s21), 40 }
  0x1d   : > { %s1995_s22 = sshll.u32 %s2660_s21, 7 }
  0x1e   : > { %s122_s23 = ssub.s32 5120, %s1995_s22 }
  0x1f   : > { %123 = vsyncadd %s1998_s24, %s122_s23  ;;  %p1690_p10 = scmp.ne.s32.totalorder %s1995_s22, 0  ;;  %s1704_s26 = smul.u32 2560, %s1916_s10 }
  0x20   : > { %s1692_s27 = sshll.u32 %s2660_s21, 2  ;;  %s133_s28 = sshll.u32 %s114_s25, 4  ;;  %s2009_s28 = int_to_ptr.vmem [resolvable:$true] %s133_s28 }
  0x21   : > { %s2007_s2 = scalar_lea.hbm %s2648_s0, %s1704_s26  ;;  %s1816_s6 = scalar_lea.hbm %s2648_s0, 5248 }
  0x22   : > { %s1812_s3 = scalar_lea.hbm %s2007_s2, %s1995_s22  ;;  %p1817_p0 = scmp.lt.u32.totalorder %s2007_s2, %s2648_s0 }
  0x23   : > { %p1813_p11 = scmp.ne.s32.totalorder %s2007_s2, %s1812_s3  ;;  %p1818_p1 = scmp.lt.u32.totalorder %s1816_s6, %s1812_s3 }
  0x24   : > { %p1820_p3 = scmp.lt.u32.totalorder %s1812_s3, %s2007_s2 }
  0x25   : > { %p1814_p12 = pnand %p1813_p11, %p1690_p10  ;;  %p1819_p2 = por %p1818_p1, %p1817_p0 }
  0x27   : > { %p1815_p13 = pneg %p1814_p12  ;;  %p1821_p4 = por %p1820_p3, %p1819_p2 }
  0x29   : > { %p1822_p5 = pnand %p1821_p4, %p1815_p13 }
  0x2b   : > { %1825 = shalt.err (!%p1822_p5)
}
  0x2c   : > { %s1826_s18 = scalar_lea.vmem %s2009_s28, %s1995_s22  ;;  %s1922_s19 = smov [#allocation4]  }
  0x2d   : > { %p1827_p6 = scmp.ne.s32.totalorder %s2009_s28, %s1826_s18  ;;  %s1830_s20 = sshll.u32 %s1922_s19, 4  ;;  %s1831_s20 = int_to_ptr.vmem [resolvable:$false] %s1830_s20 }
  0x2e   : > { %s1832_s23 = scalar_lea.vmem %s1831_s20, 10240  ;;  %p1833_p11 = scmp.lt.s32.totalorder %s2009_s28, %s1831_s20 }
  0x2f   : > { %p1828_p8 = pnand %p1827_p6, %p1690_p10  ;;  %p1834_p12 = scmp.lt.s32.totalorder %s1832_s23, %s1826_s18 }
  0x31   : > { %p1829_p9 = pneg %p1828_p8  ;;  %p1835_p0 = por %p1834_p12, %p1833_p11 }
  0x33   : > { %p1836_p1 = pnand %p1835_p0, %p1829_p9 }
  0x35   : > { %1839 = shalt.err (!%p1836_p1)
}
  0x36   : > { %s1923_s25 = smov 2624   ;;  %s1924_s26 = smov 2560  }
  0x37   : > { %139 = dma.hbm_to_vmem [thread:$0]  (%p1690_p10), %s2007_s2, %s1995_s22, %s2009_s28, %s1998_s24, %s1923_s25, %s1924_s26, %s1692_s27  }
  0x38 PF: > { %p1695_p13 = scmp.ge.s32.totalorder %s1920_s11, 1  ;;  %p141_p2 = scmp.lt.s32.totalorder %s1920_s11, 3 }
  0x3a   : > { %p142_p3 = pnand %p1695_p13, %p141_p2 }
  0x3b   : > { %s147_s29 = sand.u32 (!%p142_p3), 1, %s1904_s7  }
  0x3c   : > { %145 = sbr.rel (%p142_p3) target bundleno = 534 (0x216), region = 24  ;;  %s148_s3 = scalar_lea.sflag (!%p142_p3), [#allocation5], %s147_s29 }
  0x3d   : > { %s1708_s30 = smul.u32 (!%p142_p3), 320, %s147_s29 }
  0x3f   : > { %s2041_s4 = scalar_lea.vmem (!%p142_p3), [#allocation4], %s1708_s30 }
  0x43   : > { %1891 = dma.done.wait (%p1982_p7), %s148_s3, 5120  }
  0x44   : > { %1893 = vsyncadd (%p1982_p7), %s148_s3, 4294962176  ;;  %p1696_p10 = scmp.ne.s32.totalorder %s1912_s9, 0 }
  0x45   : > { %vm176_vm0 = vcmask (!%p1696_p10), 25600   ;;  %v1925_v0 = vmov (!%p1696_p10), 0.0   ;;  %v1926_v1 = vmov (!%p1696_p10), -inf  }
  0x46   : > { %175 = sbr.rel (%p1696_p10) target bundleno = 77 (0x4d), region = 32  ;;  %177 = vst.msk [vmem:[#allocation2] sm:$0x3] (!%p1696_p10), %vm176_vm0, %v1925_v0  ;;  %178 = vst.msk [vmem:[#allocation3] sm:$0x3] (!%p1696_p10), %vm176_vm0, %v1926_v1 }
  0x4d PF: > { %p1697_p4 = scmp.ge.s32.totalorder %s1912_s9, 1 }
  0x4e   : > { %v184_v2 = vld [vmem:[%s2041_s4 + $0x8] sm:$0xff] (!%p1697_p4)  ;;  %v183_v3 = vld [vmem:[%s2041_s4] sm:$0xff] (!%p1697_p4)  ;;  %v185_v4 = vld [vmem:[%s2041_s4 + $0x10] sm:$0xff] (!%p1697_p4)  ;;  %vm344_vm1 = vcmask (!%p1697_p4), 1043456   ;;  %vm519_vm2 = vcmask (!%p1697_p4), 1041409   ;;  %vm523_vm3 = vcmask (!%p1697_p4), 25600  }
  0x4f   : > { %182 = sbr.rel (%p1697_p4) target bundleno = 332 (0x14c), region = 36  ;;  %v186_v5 = vld [vmem:[%s2041_s4 + $0x18] sm:$0xff] (!%p1697_p4)  ;;  %v2054_v6 = vld [vmem:[%s2041_s4 + $0x20] sm:$0xff] (!%p1697_p4)  ;;  %v2057_v7 = vld [vmem:[%s2041_s4 + $0x28] sm:$0xff] (!%p1697_p4)  ;;  %v265_v11 = vcombine.high (!%p1697_p4), %v184_v2, %v184_v2  ;;  %v2077_v15 = vcombine.high (!%p1697_p4), %v183_v3, %v183_v3  ;;  %v266_v16 = vcombine.high (!%p1697_p4), %v185_v4, %v185_v4  ;;  %v2084_v20 = vsel (!%p1697_p4), %vm344_vm1, %v183_v3, 0.0 }
  0x50   : > { %v2060_v8 = vld [vmem:[%s2041_s4 + $0x30] sm:$0xff] (!%p1697_p4)  ;;  %v2063_v9 = vld [vmem:[%s2041_s4 + $0x38] sm:$0xff] (!%p1697_p4)  ;;  %v2066_v10 = vld [vmem:[%s2041_s4 + $0x40] sm:$0xff] (!%p1697_p4)  ;;  %v267_v17 = vcombine.high (!%p1697_p4), %v186_v5, %v186_v5  ;;  %v268_v18 = vcombine.high (!%p1697_p4), %v2054_v6, %v2054_v6  ;;  %v269_v19 = vcombine.high (!%p1697_p4), %v2057_v7, %v2057_v7  ;;  %v2095_v24 = vsel (!%p1697_p4), %vm344_vm1, %v184_v2, 0.0 }
  0x51   : > { %v2069_v12 = vld [vmem:[%s2041_s4 + $0x48] sm:$0xff] (!%p1697_p4)  ;;  %v2072_v13 = vld [vmem:[%s2041_s4 + $0x50] sm:$0xff] (!%p1697_p4)  ;;  %v2075_v14 = vld [vmem:[%s2041_s4 + $0x58] sm:$0xff] (!%p1697_p4)  ;;  %v270_v21 = vcombine.high (!%p1697_p4), %v2060_v8, %v2060_v8  ;;  %v271_v22 = vcombine.high (!%p1697_p4), %v2063_v9, %v2063_v9  ;;  %v2092_v23 = vcombine.high (!%p1697_p4), %v2066_v10, %v2066_v10  ;;  %v2113_v29 = vsel (!%p1697_p4), %vm344_vm1, %v265_v11, 0.0 }
  0x52   : > { %v2098_v25 = vld [vmem:[%s2041_s4 + $0x60] sm:$0xff] (!%p1697_p4)  ;;  %v2102_v26 = vcombine.high (!%p1697_p4), %v2069_v12, %v2069_v12  ;;  %v2106_v27 = vcombine.high (!%p1697_p4), %v2072_v13, %v2072_v13  ;;  %v2110_v28 = vcombine.high (!%p1697_p4), %v2075_v14, %v2075_v14  ;;  %v2116_v30 = vld [vmem:[%s2041_s4 + $0x68] sm:$0xff] (!%p1697_p4)  ;;  %v2119_v31 = vld [vmem:[%s2041_s4 + $0x70] sm:$0xff] (!%p1697_p4)  ;;  %v526_v32 = vsel (!%p1697_p4), %vm344_vm1, %v183_v3, -inf }
  0x53   : > { %v527_v33 = vsel (!%p1697_p4), %vm344_vm1, %v2077_v15, -inf  ;;  %v528_v34 = vsel (!%p1697_p4), %vm344_vm1, %v184_v2, -inf  ;;  %v530_v35 = vsel (!%p1697_p4), %vm344_vm1, %v265_v11, -inf  ;;  %v2127_v36 = vld [vmem:[%s2041_s4 + $0x78] sm:$0xff] (!%p1697_p4)  ;;  %v532_v39 = vsel (!%p1697_p4), %vm344_vm1, %v185_v4, -inf  ;;  %v2132_v41 = vld [vmem:[%s2041_s4 + $0x80] sm:$0xff] (!%p1697_p4) }
  0x54   : > { %v529_v37 = vmax.f32 (!%p1697_p4), %v526_v32, %v528_v34  ;;  %v531_v38 = vmax.f32 (!%p1697_p4), %v527_v33, %v530_v35  ;;  %v534_v40 = vsel (!%p1697_p4), %vm344_vm1, %v266_v16, -inf  ;;  %v2135_v42 = vld [vmem:[%s2041_s4 + $0x88] sm:$0xff] (!%p1697_p4)  ;;  %v2139_v43 = vcombine.high (!%p1697_p4), %v2098_v25, %v2098_v25  ;;  %v2147_v47 = vld [vmem:[%s2041_s4 + $0x90] sm:$0xff] (!%p1697_p4)  ;;  %v2158_v52 = vld [vmem:[%s2041_s4 + $0x98] sm:$0xff] (!%p1697_p4) }
  0x55   : > { %v2142_v44 = vsel (!%p1697_p4), %vm344_vm1, %v185_v4, 0.0  ;;  %v536_v45 = vsel (!%p1697_p4), %vm344_vm1, %v186_v5, -inf  ;;  %v538_v46 = vsel (!%p1697_p4), %vm344_vm1, %v267_v17, -inf  ;;  %v2151_v48 = vcombine.high (!%p1697_p4), %v2116_v30, %v2116_v30 }
  0x56   : > { %v2155_v49 = vcombine.high %v2119_v31, %v2119_v31  ;;  %v533_v50 = vmax.f32 %v529_v37, %v532_v39  ;;  %v535_v51 = vmax.f32 %v531_v38, %v534_v40  ;;  %v2162_v53 = vcombine.high %v2127_v36, %v2127_v36 }
  0x57   : > { %v2165_v54 = vsel %vm344_vm1, %v266_v16, 0.0  ;;  %v540_v55 = vsel %vm344_vm1, %v2054_v6, -inf  ;;  %v542_v56 = vsel %vm344_vm1, %v268_v18, -inf  ;;  %v2172_v57 = vcombine.high %v2132_v41, %v2132_v41 }
  0x58   : > { %v2176_v58 = vcombine.high %v2135_v42, %v2135_v42  ;;  %v537_v59 = vmax.f32 %v533_v50, %v536_v45  ;;  %v539_v60 = vmax.f32 %v535_v51, %v538_v46  ;;  %v2180_v61 = vcombine.high %v2147_v47, %v2147_v47 }
  0x59   : > { %v2183_v62 = vsel %vm344_vm1, %v186_v5, 0.0  ;;  %v544_v63 = vsel %vm344_vm1, %v2057_v7, -inf  ;;  %v546_v0 = vsel %vm344_vm1, %v269_v19, -inf  ;;  %v2190_v1 = vcombine.high %v2158_v52, %v2158_v52 }
  0x5a   : > { %v2193_v2 = vsel %vm344_vm1, %v267_v17, 0.0  ;;  %v541_v3 = vmax.f32 %v537_v59, %v540_v55  ;;  %v543_v4 = vmax.f32 %v539_v60, %v542_v56  ;;  %v2197_v11 = vsel %vm344_vm1, %v2054_v6, 0.0 }
  0x5b   : > { %v2200_v5 = vsel %vm344_vm1, %v268_v18, 0.0  ;;  %v548_v16 = vsel %vm344_vm1, %v2060_v8, -inf  ;;  %v550_v32 = vsel %vm344_vm1, %v270_v21, -inf  ;;  %v2207_v33 = vsel %vm344_vm1, %v2057_v7, 0.0 }
  0x5c   : > { %v2210_v17 = vsel %vm344_vm1, %v269_v19, 0.0  ;;  %v545_v34 = vmax.f32 %v541_v3, %v544_v63  ;;  %v547_v35 = vmax.f32 %v543_v4, %v546_v0  ;;  %v2214_v6 = vsel %vm344_vm1, %v2060_v8, 0.0  ;;  %v2265_v0 = vld [vmem:[%s2041_s4 + $0xa0] sm:$0xff] }
  0x5d   : > { %v2217_v18 = vsel %vm344_vm1, %v270_v21, 0.0  ;;  %v552_v37 = vsel %vm344_vm1, %v2063_v9, -inf  ;;  %v554_v38 = vsel %vm344_vm1, %v271_v22, -inf  ;;  %v2224_v7 = vsel %vm344_vm1, %v2063_v9, 0.0 }
  0x5e   : > { %v2227_v19 = vsel %vm344_vm1, %v271_v22, 0.0  ;;  %v549_v39 = vmax.f32 %v545_v34, %v548_v16  ;;  %v551_v40 = vmax.f32 %v547_v35, %v550_v32  ;;  %v2231_v8 = vsel %vm344_vm1, %v2066_v10, 0.0  ;;  %v2285_v35 = vld [vmem:[%s2041_s4 + $0xa8] sm:$0xff] }
  0x5f   : > { %v2235_v21 = vsel %vm344_vm1, %v2092_v23, 0.0  ;;  %v556_v45 = vsel %vm344_vm1, %v2066_v10, -inf  ;;  %v558_v9 = vsel %vm344_vm1, %v2092_v23, -inf  ;;  %v2243_v22 = vsel %vm344_vm1, %v2069_v12, 0.0 }
  0x60   : > { %v553_v46 = vmax.f32 %v549_v39, %v552_v37  ;;  %v555_v50 = vmax.f32 %v551_v40, %v554_v38  ;;  %v346_v51 = vsel %vm344_vm1, %v2077_v15, 0.0  ;;  %v2249_v55 = vsel %vm344_vm1, %v2102_v26, 0.0 }
  0x61   : > { %v560_v56 = vsel %vm344_vm1, %v2069_v12, -inf  ;;  %v562_v10 = vsel %vm344_vm1, %v2102_v26, -inf  ;;  %v347_v23 = vadd.f32 %v346_v51, %v2084_v20  ;;  %v2258_v59 = vsel %vm344_vm1, %v2072_v13, 0.0 }
  0x62   : > { %v2262_v15 = vsel %vm344_vm1, %v2106_v27, 0.0  ;;  %v557_v60 = vmax.f32 %v553_v46, %v556_v45  ;;  %v559_v63 = vmax.f32 %v555_v50, %v558_v9  ;;  %v2269_v12 = vsel %vm344_vm1, %v2075_v14, 0.0 }
  0x63   : > { %v564_v26 = vsel %vm344_vm1, %v2072_v13, -inf  ;;  %v566_v20 = vsel %vm344_vm1, %v2106_v27, -inf  ;;  %v349_v3 = vadd.f32 %v2095_v24, %v347_v23  ;;  %v2278_v4 = vsel %vm344_vm1, %v2110_v28, 0.0 }
  0x64   : > { %v2282_v16 = vsel %vm344_vm1, %v2098_v25, 0.0  ;;  %v561_v32 = vmax.f32 %v557_v60, %v560_v56  ;;  %v563_v34 = vmax.f32 %v559_v63, %v562_v10  ;;  %v568_v13 = vsel %vm344_vm1, %v2075_v14, -inf  ;;  %v2316_v56 = vld [vmem:[%s2041_s4 + $0xb0] sm:$0xff] }
  0x65   : > { %v570_v27 = vsel %vm344_vm1, %v2110_v28, -inf  ;;  %v351_v24 = vadd.f32 %v2113_v29, %v349_v3  ;;  %v2294_v37 = vcombine.high %v2265_v0, %v2265_v0  ;;  %v2298_v38 = vsel %vm344_vm1, %v2139_v43, 0.0 }
  0x66   : > { %v2302_v39 = vsel %vm344_vm1, %v2116_v30, 0.0  ;;  %v565_v40 = vmax.f32 %v561_v32, %v564_v26  ;;  %v567_v45 = vmax.f32 %v563_v34, %v566_v20  ;;  %v572_v14 = vsel %vm344_vm1, %v2098_v25, -inf }
  0x67   : > { %v574_v28 = vsel %vm344_vm1, %v2139_v43, -inf  ;;  %v353_v29 = vadd.f32 %v2142_v44, %v351_v24  ;;  %v2311_v9 = vcombine.high %v2285_v35, %v2285_v35  ;;  %v576_v51 = vsel %vm344_vm1, %v2116_v30, -inf  ;;  %v2343_v24 = vld [vmem:[%s2041_s4 + $0xb8] sm:$0xff] }
  0x68   : > { %v569_v46 = vmax.f32 %v565_v40, %v568_v13  ;;  %v571_v50 = vmax.f32 %v567_v45, %v570_v27  ;;  %v426_v10 = vsel %vm344_vm1, %v2265_v0, 0.0  ;;  %v578_v25 = vsel %vm344_vm1, %v2151_v48, -inf }
  0x69   : > { %v355_v43 = vadd.f32 %v2165_v54, %v353_v29  ;;  %v427_v44 = vsel %vm344_vm1, %v2294_v37, 0.0  ;;  %v429_v23 = vsel %vm344_vm1, %v2285_v35, 0.0  ;;  %v580_v30 = vsel %vm344_vm1, %v2119_v31, -inf }
  0x6a   : > { %v573_v60 = vmax.f32 %v569_v46, %v572_v14  ;;  %v575_v63 = vmax.f32 %v571_v50, %v574_v28  ;;  %v428_v26 = vadd.f32 %v427_v44, %v426_v10  ;;  %v582_v20 = vsel %vm344_vm1, %v2155_v49, -inf }
  0x6b   : > { %v357_v3 = vadd.f32 %v2183_v62, %v355_v43  ;;  %v2334_v54 = vcombine.high %v2316_v56, %v2316_v56  ;;  %v431_v32 = vsel %vm344_vm1, %v2311_v9, 0.0  ;;  %v2340_v34 = vsel %vm344_vm1, %v2151_v48, 0.0 }
  0x6c   : > { %v577_v13 = vmax.f32 %v573_v60, %v576_v51  ;;  %v579_v27 = vmax.f32 %v575_v63, %v578_v25  ;;  %v430_v40 = vadd.f32 %v429_v23, %v428_v26  ;;  %v584_v62 = vsel %vm344_vm1, %v2127_v36, -inf  ;;  %v207_v60 = vld [vmem:[%s2041_s4 + $0xc0] sm:$0xff] }
  0x6d   : > { %v586_v45 = vsel %vm344_vm1, %v2162_v53, -inf  ;;  %v359_v14 = vadd.f32 %v2193_v2, %v357_v3  ;;  %v433_v28 = vsel %vm344_vm1, %v2316_v56, 0.0  ;;  %v588_v46 = vsel %vm344_vm1, %v2132_v41, -inf }
  0x6e   : > { %v581_v29 = vmax.f32 %v577_v13, %v580_v30  ;;  %v583_v48 = vmax.f32 %v579_v27, %v582_v20  ;;  %v432_v50 = vadd.f32 %v431_v32, %v430_v40  ;;  %v590_v51 = vsel %vm344_vm1, %v2172_v57, -inf  ;;  %v208_v20 = vld [vmem:[%s2041_s4 + $0xc8] sm:$0xff] }
  0x6f   : > { %v361_v10 = vadd.f32 %v2197_v11, %v359_v14  ;;  %v287_v25 = vcombine.high %v2343_v24, %v2343_v24  ;;  %v435_v2 = vsel %vm344_vm1, %v2334_v54, 0.0  ;;  %v2363_v43 = vsel %vm344_vm1, %v2119_v31, 0.0 }
  0x70   : > { %v585_v44 = vmax.f32 %v581_v29, %v584_v62  ;;  %v587_v23 = vmax.f32 %v583_v48, %v586_v45  ;;  %v434_v63 = vadd.f32 %v433_v28, %v432_v50  ;;  %v592_v30 = vsel %vm344_vm1, %v2135_v42, -inf  ;;  %v209_v29 = vld [vmem:[%s2041_s4 + $0xd0] sm:$0xff] }
  0x71   : > { %v594_v11 = vsel %vm344_vm1, %v2176_v58, -inf  ;;  %v363_v26 = vadd.f32 %v2200_v5, %v361_v10  ;;  %v437_v3 = vsel %vm344_vm1, %v2343_v24, 0.0  ;;  %v596_v13 = vsel %vm344_vm1, %v2147_v47, -inf }
  0x72   : > { %v589_v32 = vmax.f32 %v585_v44, %v588_v46  ;;  %v591_v31 = vmax.f32 %v587_v23, %v590_v51  ;;  %v436_v27 = vadd.f32 %v435_v2, %v434_v63  ;;  %v598_v40 = vsel %vm344_vm1, %v2180_v61, -inf }
  0x73   : > { %v365_v62 = vadd.f32 %v2207_v33, %v363_v26  ;;  %v288_v45 = vcombine.high %v207_v60, %v207_v60  ;;  %v439_v14 = vsel %vm344_vm1, %v287_v25, 0.0  ;;  %v289_v48 = vcombine.high %v208_v20, %v208_v20 }
  0x74   : > { %v593_v28 = vmax.f32 %v589_v32, %v592_v30  ;;  %v595_v5 = vmax.f32 %v591_v31, %v594_v11  ;;  %v438_v50 = vadd.f32 %v437_v3, %v436_v27  ;;  %v600_v46 = vsel %vm344_vm1, %v2158_v52, -inf }
  0x75   : > { %v602_v51 = vsel %vm344_vm1, %v2190_v1, -inf  ;;  %v367_v10 = vadd.f32 %v2210_v17, %v365_v62  ;;  %v441_v2 = vsel %vm344_vm1, %v207_v60, 0.0  ;;  %v2389_v33 = vsel %vm344_vm1, %v2155_v49, 0.0 }
  0x76   : > { %v597_v44 = vmax.f32 %v593_v28, %v596_v13  ;;  %v599_v23 = vmax.f32 %v595_v5, %v598_v40  ;;  %v440_v63 = vadd.f32 %v439_v14, %v438_v50  ;;  %v290_v11 = vcombine.high %v209_v29, %v209_v29 }
  0x77   : > { %v369_v30 = vadd.f32 %v2214_v6, %v367_v10  ;;  %v443_v26 = vsel %vm344_vm1, %v288_v45, 0.0  ;;  %v445_v3 = vsel %vm344_vm1, %v208_v20, 0.0  ;;  %v447_v27 = vsel %vm344_vm1, %v289_v48, 0.0 }
  0x78   : > { %v601_v32 = vmax.f32 %v597_v44, %v600_v46  ;;  %v603_v31 = vmax.f32 %v599_v23, %v602_v51  ;;  %v442_v17 = vadd.f32 %v441_v2, %v440_v63  ;;  %v607_v49 = vsel %vm344_vm1, %v2265_v0, -inf  ;;  %v210_v46 = vld [vmem:[%s2041_s4 + $0xd8] sm:$0xff] }
  0x79   : > { %v371_v62 = vadd.f32 %v2217_v18, %v369_v30  ;;  %v608_v13 = vsel %vm344_vm1, %v2294_v37, -inf  ;;  %v609_v6 = vsel %vm344_vm1, %v2285_v35, -inf  ;;  %v611_v5 = vsel %vm344_vm1, %v2311_v9, -inf }
  0x7a   : > { %v604_v40 = vmax.f32 %v601_v32, %v603_v31  ;;  %v444_v14 = vadd.f32 %v443_v26, %v442_v17  ;;  %v610_v28 = vmax.f32 %v607_v49, %v609_v6  ;;  %v612_v51 = vmax.f32 %v608_v13, %v611_v5 }
  0x7b   : > { %v373_v50 = vadd.f32 %v2224_v7, %v371_v62  ;;  %v613_v18 = vsel %vm344_vm1, %v2316_v56, -inf  ;;  %v615_v0 = vsel %vm344_vm1, %v2334_v54, -inf  ;;  %v617_v10 = vsel %vm344_vm1, %v2343_v24, -inf }
  0x7c   : > { %605 = vmax.xlane.f32.xlu1 %v604_v40  ;;  %v446_v37 = vadd.f32 %v445_v3, %v444_v14  ;;  %v614_v35 = vmax.f32 %v610_v28, %v613_v18  ;;  %v619_v2 = vsel %vm344_vm1, %v287_v25, -inf  ;;  %v449_v7 = vsel %vm344_vm1, %v209_v29, 0.0  ;;  %v211_v3 = vld [vmem:[%s2041_s4 + $0xe0] sm:$0xff]  ;;  %v213_v14 = vld [vmem:[%s2041_s4 + $0xf0] sm:$0xff] }
  0x7d   : > { %v375_v9 = vadd.f32 %v2227_v19, %v373_v50  ;;  %v616_v44 = vmax.f32 %v612_v51, %v615_v0  ;;  %v621_v56 = vsel %vm344_vm1, %v207_v60, -inf  ;;  %v291_v23 = vcombine.high %v210_v46, %v210_v46  ;;  %v214_v0 = vld [vmem:[%s2041_s4 + $0xf8] sm:$0xff] }
  0x7e   : > { %v448_v63 = vadd.f32 %v447_v27, %v446_v37  ;;  %v618_v30 = vmax.f32 %v614_v35, %v617_v10  ;;  %v623_v54 = vsel %vm344_vm1, %v288_v45, -inf  ;;  %v451_v24 = vsel %vm344_vm1, %v290_v11, 0.0  ;;  %v212_v45 = vld [vmem:[%s2041_s4 + $0xe8] sm:$0xff] }
  0x7f   : > { %v377_v26 = vadd.f32 %v2231_v8, %v375_v9  ;;  %v620_v32 = vmax.f32 %v616_v44, %v619_v2  ;;  %v625_v19 = vsel %vm344_vm1, %v208_v20, -inf  ;;  %v2423_v25 = vsel %vm344_vm1, %v2127_v36, 0.0 }
  0x80   : > { %v450_v31 = vadd.f32 %v449_v7, %v448_v63  ;;  %v622_v60 = vmax.f32 %v618_v30, %v621_v56  ;;  %v627_v17 = vsel %vm344_vm1, %v289_v48, -inf  ;;  %v453_v8 = vsel %vm344_vm1, %v210_v46, 0.0  ;;  %v2443_v7 = vld [vmem:[%s2041_s4 + $0x100] sm:$0xff] }
  0x81   : > { %v379_v27 = vadd.f32 %v2235_v21, %v377_v26  ;;  %v624_v62 = vmax.f32 %v620_v32, %v623_v54  ;;  %v629_v49 = vsel %vm344_vm1, %v209_v29, -inf  ;;  %v292_v13 = vcombine.high %v211_v3, %v211_v3 }
  0x82   : > { %v452_v6 = vadd.f32 %v451_v24, %v450_v31  ;;  %v626_v20 = vmax.f32 %v622_v60, %v625_v19  ;;  %v631_v40 = vsel %vm344_vm1, %v290_v11, -inf  ;;  %v455_v28 = vsel %vm344_vm1, %v291_v23, 0.0 }
  0x83   : > { %v381_v36 = vadd.f32 %v2243_v22, %v379_v27  ;;  %v628_v48 = vmax.f32 %v624_v62, %v627_v17  ;;  %v633_v21 = vsel %vm344_vm1, %v210_v46, -inf  ;;  %v293_v5 = vcombine.high %v212_v45, %v212_v45 }
  0x84   : > { %v454_v50 = vadd.f32 %v453_v8, %v452_v6  ;;  %v630_v51 = vmax.f32 %v626_v20, %v629_v49  ;;  %v635_v18 = vsel %vm344_vm1, %v291_v23, -inf  ;;  %v457_v37 = vsel %vm344_vm1, %v211_v3, 0.0  ;;  %v2459_v8 = vld [vmem:[%s2041_s4 + $0x110] sm:$0xff] }
  0x85   : > { %v383_v29 = vadd.f32 %v2249_v55, %v381_v36  ;;  %v632_v11 = vmax.f32 %v628_v48, %v631_v40  ;;  %v637_v22 = vsel %vm344_vm1, %v211_v3, -inf  ;;  %v294_v35 = vcombine.high %v213_v14, %v213_v14  ;;  %v2450_v3 = vld [vmem:[%s2041_s4 + $0x108] sm:$0xff]  ;;  %v2470_v36 = vld [vmem:[%s2041_s4 + $0x118] sm:$0xff] }
  0x86   : > { %v456_v10 = vadd.f32 %v455_v28, %v454_v50  ;;  %v634_v2 = vmax.f32 %v630_v51, %v633_v21  ;;  %v639_v9 = vsel %vm344_vm1, %v292_v13, -inf  ;;  %v459_v44 = vsel %vm344_vm1, %v292_v13, 0.0 }
  0x87   : > { %v385_v46 = vadd.f32 %v2258_v59, %v383_v29  ;;  %v636_v56 = vmax.f32 %v632_v11, %v635_v18  ;;  %v641_v55 = vsel %vm344_vm1, %v212_v45, -inf  ;;  %v295_v23 = vcombine.high %v214_v0, %v214_v0 }
  0x88   : > { %v458_v63 = vadd.f32 %v457_v37, %v456_v10  ;;  %v638_v30 = vmax.f32 %v634_v2, %v637_v22  ;;  %v643_v54 = vsel %vm344_vm1, %v293_v5, -inf  ;;  %v461_v24 = vsel %vm344_vm1, %v212_v45, 0.0 }
  0x89   : > { %v387_v26 = vadd.f32 %v2262_v15, %v385_v46  ;;  %v640_v59 = vmax.f32 %v636_v56, %v639_v9  ;;  %v645_v32 = vsel %vm344_vm1, %v213_v14, -inf  ;;  %v296_v19 = vcombine.high %v2443_v7, %v2443_v7  ;;  %v2495_v9 = vld [vmem:[%s2041_s4 + $0x128] sm:$0xff] }
  0x8a   : > { %v460_v31 = vadd.f32 %v459_v44, %v458_v63  ;;  %v642_v60 = vmax.f32 %v638_v30, %v641_v55  ;;  %v647_v17 = vsel %vm344_vm1, %v294_v35, -inf  ;;  %v463_v15 = vsel %vm344_vm1, %v293_v5, 0.0 }
  0x8b   : > { %v389_v27 = vadd.f32 %v2269_v12, %v387_v26  ;;  %v644_v62 = vmax.f32 %v640_v59, %v643_v54  ;;  %v649_v45 = vsel %vm344_vm1, %v214_v0, -inf  ;;  %v2465_v49 = vcombine.high %v2450_v3, %v2450_v3  ;;  %v2508_v54 = vld [vmem:[%s2041_s4 + $0x130] sm:$0xff] }
  0x8c   : > { %v462_v13 = vadd.f32 %v461_v24, %v460_v31  ;;  %v646_v6 = vmax.f32 %v642_v60, %v645_v32  ;;  %v651_v20 = vsel %vm344_vm1, %v295_v23, -inf  ;;  %v465_v12 = vsel %vm344_vm1, %v213_v14, 0.0 }
  0x8d   : > { %v391_v40 = vadd.f32 %v2278_v4, %v389_v27  ;;  %v648_v28 = vmax.f32 %v644_v62, %v647_v17  ;;  %v653_v48 = vsel %vm344_vm1, %v2443_v7, -inf  ;;  %v2477_v21 = vcombine.high %v2459_v8, %v2459_v8  ;;  %v2482_v4 = vld [vmem:[%s2041_s4 + $0x120] sm:$0xff] }
  0x8e   : > { %v464_v5 = vadd.f32 %v463_v15, %v462_v13  ;;  %v650_v50 = vmax.f32 %v646_v6, %v649_v45  ;;  %v655_v51 = vsel %vm344_vm1, %v296_v19, -inf  ;;  %v467_v29 = vsel %vm344_vm1, %v294_v35, 0.0 }
  0x8f   : > { %v393_v18 = vadd.f32 %v2282_v16, %v391_v40  ;;  %v652_v14 = vmax.f32 %v648_v28, %v651_v20  ;;  %v657_v37 = vsel %vm344_vm1, %v2450_v3, -inf  ;;  %v2489_v11 = vcombine.high %v2470_v36, %v2470_v36 }
  0x90   : > { %v466_v22 = vadd.f32 %v465_v12, %v464_v5  ;;  %v654_v10 = vmax.f32 %v650_v50, %v653_v48  ;;  %v659_v2 = vsel %vm344_vm1, %v2465_v49, -inf  ;;  %v469_v35 = vsel %vm344_vm1, %v214_v0, 0.0 }
  0x91   : > { %v395_v16 = vadd.f32 %v2298_v38, %v393_v18  ;;  %v656_v46 = vmax.f32 %v652_v14, %v655_v51  ;;  %v661_v44 = vsel %vm344_vm1, %v2459_v8, -inf  ;;  %v2502_v56 = vcombine.high %v2482_v4, %v2482_v4 }
  0x92   : > { %v468_v55 = vadd.f32 %v467_v29, %v466_v22  ;;  %v658_v63 = vmax.f32 %v654_v10, %v657_v37  ;;  %v663_v30 = vsel %vm344_vm1, %v2477_v21, -inf  ;;  %v471_v0 = vsel %vm344_vm1, %v295_v23, 0.0 }
  0x93   : > { %v397_v38 = vadd.f32 %v2302_v39, %v395_v16  ;;  %v660_v26 = vmax.f32 %v656_v46, %v659_v2  ;;  %v665_v24 = vsel %vm344_vm1, %v2470_v36, -inf  ;;  %v2515_v59 = vcombine.high %v2495_v9, %v2495_v9  ;;  %v2521_v39 = vld [vmem:[%s2041_s4 + $0x138] sm:$0xff] }
  0x94   : > { %v470_v32 = vadd.f32 %v469_v35, %v468_v55  ;;  %v662_v31 = vmax.f32 %v658_v63, %v661_v44  ;;  %v667_v60 = vsel %vm344_vm1, %v2489_v11, -inf  ;;  %v473_v23 = vsel %vm344_vm1, %v2443_v7, 0.0 }
  0x95   : > { %v399_v17 = vadd.f32 %v2340_v34, %v397_v38  ;;  %v664_v27 = vmax.f32 %v660_v26, %v663_v30  ;;  %v669_v15 = vsel %vm344_vm1, %v2482_v4, -inf  ;;  %v2529_v62 = vcombine.high %v2508_v54, %v2508_v54 }
  0x96   : > { %v472_v45 = vadd.f32 %v471_v0, %v470_v32  ;;  %v666_v13 = vmax.f32 %v662_v31, %v665_v24  ;;  %v671_v6 = vsel %vm344_vm1, %v2502_v56, -inf  ;;  %v475_v20 = vsel %vm344_vm1, %v296_v19, 0.0 }
  0x97   : > { %v401_v34 = vadd.f32 %v2363_v43, %v399_v17  ;;  %v668_v40 = vmax.f32 %v664_v27, %v667_v60  ;;  %v673_v7 = vsel %vm344_vm1, %v2495_v9, -inf  ;;  %v2539_v12 = vcombine.high %v2521_v39, %v2521_v39 }
  0x98   : > { %v474_v28 = vadd.f32 %v473_v23, %v472_v45  ;;  %v670_v48 = vmax.f32 %v666_v13, %v669_v15  ;;  %v675_v5 = vsel %vm344_vm1, %v2515_v59, -inf  ;;  %v477_v43 = vsel %vm344_vm1, %v2450_v3, 0.0 }
  0x99   : > { %v403_v50 = vadd.f32 %v2389_v33, %v401_v34  ;;  %v672_v51 = vmax.f32 %v668_v40, %v671_v6  ;;  %v677_v19 = vsel %vm344_vm1, %v2508_v54, -inf  ;;  %v406_v18 = vsel %vm344_vm1, %v2162_v53, 0.0 }
  0x9a   : > { %v476_v29 = vadd.f32 %v475_v20, %v474_v28  ;;  %v674_v14 = vmax.f32 %v670_v48, %v673_v7  ;;  %v679_v37 = vsel %vm344_vm1, %v2529_v62, -inf  ;;  %v479_v33 = vsel %vm344_vm1, %v2465_v49, 0.0 }
  0x9b   : > { %v405_v22 = vadd.f32 %v2423_v25, %v403_v50  ;;  %v676_v10 = vmax.f32 %v672_v51, %v675_v5  ;;  %v681_v3 = vsel %vm344_vm1, %v2521_v39, -inf  ;;  %v408_v2 = vsel %vm344_vm1, %v2132_v41, 0.0 }
  0x9c   : > { %v478_v16 = vadd.f32 %v477_v43, %v476_v29  ;;  %v678_v35 = vmax.f32 %v674_v14, %v677_v19  ;;  %v683_v53 = vsel %vm344_vm1, %v2539_v12, -inf  ;;  %v481_v46 = vsel %vm344_vm1, %v2459_v8, 0.0 }
  0x9d   : > { %v680_v44 = vmax.f32 %v676_v10, %v679_v37  ;;  %v407_v25 = vadd.f32 %v406_v18, %v405_v22  ;;  %v410_v49 = vsel %vm344_vm1, %v2172_v57, 0.0  ;;  %v483_v30 = vsel %vm344_vm1, %v2477_v21, 0.0 }
  0x9e   : > { %v480_v55 = vadd.f32 %v479_v33, %v478_v16  ;;  %v682_v63 = vmax.f32 %v678_v35, %v681_v3  ;;  %v412_v26 = vsel %vm344_vm1, %v2135_v42, 0.0  ;;  %v485_v24 = vsel %vm344_vm1, %v2470_v36, 0.0  ;;  %v223_v3 = vld [vmem:[#allocation2] sm:$0x3] }
  0x9f   : > { %v684_v38 = vmax.f32 %v680_v44, %v683_v53  ;;  %v409_v41 = vadd.f32 %v408_v2, %v407_v25  ;;  %v414_v60 = vsel %vm344_vm1, %v2176_v58, 0.0  ;;  %v487_v57 = vsel %vm344_vm1, %v2489_v11, 0.0 }
  0xa0   : > { %v482_v0 = vadd.f32 %v481_v46, %v480_v55  ;;  %v416_v23 = vsel %vm344_vm1, %v2147_v47, 0.0  ;;  %v489_v42 = vsel %vm344_vm1, %v2482_v4, 0.0  ;;  %v418_v36 = vsel %vm344_vm1, %v2180_v61, 0.0 }
  0xa1   : > { %v685_v8 = vmax.f32 %v682_v63, %v684_v38  ;;  %v411_v32 = vadd.f32 %v410_v49, %v409_v41  ;;  %v491_v58 = vsel %vm344_vm1, %v2502_v56, 0.0  ;;  %v420_v11 = vsel %vm344_vm1, %v2158_v52, 0.0 }
  0xa2   : > { %v484_v31 = vadd.f32 %v483_v30, %v482_v0  ;;  %v493_v47 = vsel %vm344_vm1, %v2495_v9, 0.0  ;;  %v422_v4 = vsel %vm344_vm1, %v2190_v1, 0.0  ;;  %v495_v61 = vsel %vm344_vm1, %v2515_v59, 0.0 }
  0xa3   : > { %686 = vmax.xlane.f32.xlu1 %v685_v8  ;;  %v413_v21 = vadd.f32 %v412_v26, %v411_v32  ;;  %v497_v56 = vsel %vm344_vm1, %v2508_v54, 0.0  ;;  %v499_v52 = vsel %vm344_vm1, %v2529_v62, 0.0  ;;  %v501_v9 = vsel %vm344_vm1, %v2521_v39, 0.0  ;;  %v525_v62 = vld [vmem:[#allocation3] sm:$0x3] }
  0xa4   : > { %v486_v17 = vadd.f32 %v485_v24, %v484_v31  ;;  %v503_v5 = vsel %vm344_vm1, %v2539_v12, 0.0  ;;  %v509_v43 = vlaneseq }
  0xa5   : > { %v415_v27 = vadd.f32 %v414_v60, %v413_v21 }
  0xa6   : > { %v488_v15 = vadd.f32 %v487_v57, %v486_v17  ;;  %v510_v51 = vand.u32 127, %v509_v43  ;;  %v512_v19 = vshrl.u32 %v509_v43, 7 }
  0xa7   : > { %v417_v45 = vadd.f32 %v416_v23, %v415_v27 }
  0xa8   : > { %v490_v13 = vadd.f32 %v489_v42, %v488_v15  ;;  %v513_v18 = vsub.s32 %v510_v51, %v512_v19 }
  0xa9   : > { %v419_v6 = vadd.f32 %v418_v36, %v417_v45 }
  0xaa   : > { %v492_v34 = vadd.f32 %v491_v58, %v490_v13 }
  0xab   : > { %v421_v20 = vadd.f32 %v420_v11, %v419_v6 }
  0xac   : > { %v494_v40 = vadd.f32 %v493_v47, %v492_v34 }
  0xad   : > { %v423_v7 = vadd.f32 %v422_v4, %v421_v20 }
  0xae   : > { %v496_v28 = vadd.f32 %v495_v61, %v494_v40 }
  0xaf   : > { %424 = vadd.xlane.f32.xlu0 %v423_v7 }
  0xb0   : > { %v498_v48 = vadd.f32 %v497_v56, %v496_v28 }
  0xb2   : > { %v500_v1 = vadd.f32 %v499_v52, %v498_v48 }
  0xb4   : > { %v502_v50 = vadd.f32 %v501_v9, %v500_v1 }
  0xb6   : > { %v504_v59 = vadd.f32 %v503_v5, %v502_v50 }
  0xb8   : > { %505 = vadd.xlane.f32.xlu0 %v504_v59 }
 0x109   : > { %v606_v54 = vpop.xlane.xlu1 %605 }
 0x10a   : > { %v693_v29 = vrot.slane %v606_v54, %v513_v18 }
 0x130   : > { %v687_v14 = vpop.xlane.xlu1 %686 }
 0x131   : > { %v697_v37 = vrot.slane %v687_v14, %v513_v18 }
 0x133   : > { %v698_v22 = vsel %vm519_vm2, %v697_v37, %v693_v29 }
 0x134   : > { %v700_v39 = vmax.f32 %v525_v62, %v698_v22 }
 0x136   : > { %701 = vst.msk [vmem:[#allocation3] sm:$0x3] %vm523_vm3, %v700_v39 }
 0x13c   : > { %v425_v33 = vpop.xlane.xlu0 %424 }
 0x13d   : > { %v514_v12 = vrot.slane %v425_v33, %v513_v18 }
 0x145   : > { %v506_v10 = vpop.xlane.xlu0 %505 }
 0x146   : > { %v518_v2 = vrot.slane %v506_v10, %v513_v18 }
 0x148   : > { %v520_v16 = vsel %vm519_vm2, %v518_v2, %v514_v12 }
 0x149   : > { %v522_v35 = vadd.f32 %v520_v16, %v223_v3 }
 0x14b   : > { %524 = vst.msk [vmem:[#allocation2] sm:$0x3] %vm523_vm3, %v522_v35 }
 0x14c PF: > { %p1698_p7 = scmp.ne.s32.totalorder %s1912_s9, 1 }
 0x14d   : > { %v706_v53 = vlaneseq (!%p1698_p7)  ;;  %v747_v44 = vld [vmem:[%s2041_s4] sm:$0xff] (!%p1698_p7)  ;;  %vm1108_vm4 = vcmask (!%p1698_p7), 1043456   ;;  %vm1281_vm6 = vcmask (!%p1698_p7), 1041409   ;;  %v1367_v23 = vld [vmem:[#allocation3] sm:$0x3] (!%p1698_p7)  ;;  %vm1285_vm7 = vcmask (!%p1698_p7), 25600  }
 0x14e   : > { %705 = sbr.rel (%p1698_p7) target bundleno = 508 (0x1fc), region = 40  ;;  %v767_v25 = vld [vmem:[%s2041_s4 + $0xa0] sm:$0xff] (!%p1698_p7)  ;;  %v1927_v15 = vmov (!%p1698_p7), 1966171168   ;;  %vm1571_vm8 = vcmask (!%p1698_p7), 24576  }
 0x14f   : > { %v707_v46 = vand.u32 (!%p1698_p7), 127, %v706_v53  ;;  %v1274_v55 = vshrl.u32 (!%p1698_p7), %v706_v53, 7  ;;  %v1548_v45 = vunpack.c.l.s4 (!%p1698_p7), %v1927_v15 }
 0x151   : > { %vm787_vm5 = vcmp.lt.s32.totalorder (!%p1698_p7), %v707_v46, 64  ;;  %v1275_v63 = vsub.s32 (!%p1698_p7), %v707_v46, %v1274_v55  ;;  %v1549_v47 = vunpack.c.0.s8 (!%p1698_p7), %v1548_v45 }
 0x152   : > { %v1287_v49 = vsel (!%p1698_p7), %vm787_vm5, %v747_v44, -inf  ;;  %v1027_v30 = vsel (!%p1698_p7), %vm787_vm5, %v747_v44, 0.0  ;;  %v1327_v38 = vsel (!%p1698_p7), %vm787_vm5, %v767_v25, -inf  ;;  %v1067_v41 = vsel (!%p1698_p7), %vm787_vm5, %v767_v25, 0.0  ;;  %v1107_v27 = vld [vmem:[#allocation2] sm:$0x3] (!%p1698_p7) }
 0x153   : > { %v1368_v0 = vsel (!%p1698_p7), %vm1108_vm4, %v1287_v49, -inf  ;;  %v1109_v26 = vsel (!%p1698_p7), %vm1108_vm4, %v1027_v30, 0.0  ;;  %v1449_v24 = vsel (!%p1698_p7), %vm1108_vm4, %v1327_v38, -inf  ;;  %v1190_v8 = vsel (!%p1698_p7), %vm1108_vm4, %v1067_v41, 0.0 }
 0x154   : > { %1447 = vmax.xlane.f32.xlu1 (!%p1698_p7), %v1368_v0  ;;  %1188 = vadd.xlane.f32.xlu0 (!%p1698_p7), %v1109_v26  ;;  %v1552_v4 = vsub.s32 (!%p1698_p7), %v1549_v47, %v1274_v55 }
 0x158   : > { %1528 = vmax.xlane.f32.xlu1 %v1449_v24  ;;  %1269 = vadd.xlane.f32.xlu0 %v1190_v8 }
 0x1e1   : > { %v1448_v32 = vpop.xlane.xlu1 %1447  ;;  %v1189_v31 = vpop.xlane.xlu0 %1188 }
 0x1e2   : > { %v1535_v60 = vrot.slane %v1448_v32, %v1275_v63  ;;  %v1276_v17 = vrot.slane %v1189_v31, %v1275_v63 }
 0x1e5   : > { %v1529_v57 = vpop.xlane.xlu1 %1528  ;;  %v1270_v21 = vpop.xlane.xlu0 %1269 }
 0x1e6   : > { %v1539_v42 = vrot.slane %v1529_v57, %v1275_v63  ;;  %v1280_v36 = vrot.slane %v1270_v21, %v1275_v63 }
 0x1e8   : > { %v1540_v58 = vsel %vm1281_vm6, %v1539_v42, %v1535_v60  ;;  %v1282_v11 = vsel %vm1281_vm6, %v1280_v36, %v1276_v17 }
 0x1e9   : > { %v1542_v13 = vmax.f32 %v1367_v23, %v1540_v58  ;;  %v1284_v6 = vadd.f32 %v1282_v11, %v1107_v27 }
 0x1eb   : > { %1543 = vst.msk [vmem:[#allocation3] sm:$0x3] %vm1285_vm7, %v1542_v13  ;;  %1286 = vst.msk [vmem:[#allocation2] sm:$0x3] %vm1285_vm7, %v1284_v6 }
 0x1f2   : > { %v1699_v34 = vld.sshfl [vmem:[#allocation3] sm:$0x11 pattern:$0x75316420]  ;;  %v1544_v20 = vld [vmem:[#allocation2] sm:$0x3] }
 0x1f3   : > { %v1583_v61 = vcombine.high %v1699_v34, %v1699_v34  ;;  %v1590_v40 = vrot.slane %v1699_v34, %v1552_v4  ;;  %v1545_v7 = vmul.f32 0.00019290124, %v1544_v20 }
 0x1f5   : > { %v1597_v56 = vrot.slane %v1583_v61, %v1552_v4  ;;  %1600 = vst.msk [vmem:[#allocation7 + $0x1] sm:$0x1] %vm1571_vm8, %v1590_v40  ;;  %v1553_v28 = vrot.slane %v1545_v7, %v1552_v4 }
 0x1f7   : > { %1601 = vst.msk [vmem:[#allocation7 + $0x3] sm:$0x1] %vm1571_vm8, %v1597_v56  ;;  %v1554_v52 = vcombine.high %v1553_v28, %v1553_v28  ;;  %v1561_v48 = vrot.slane %v1553_v28, %v1552_v4 }
 0x1f9   : > { %v1568_v9 = vrot.slane %v1554_v52, %v1552_v4  ;;  %1572 = vst.msk [vmem:[#allocation7] sm:$0x1] %vm1571_vm8, %v1561_v48 }
 0x1fb   : > { %1573 = vst.msk [vmem:[#allocation7 + $0x2] sm:$0x1] %vm1571_vm8, %v1568_v9 }
 0x1fc PF: > { %p2604_p5 = scmp.eq.s32.totalorder %s1686_s12, 1  ;;  %s1928_s16 = smov [#allocation7]  }
 0x1fd   : > { %s1612_s21 = sshll.u32 %s1928_s16, 4  ;;  %s1613_s21 = int_to_ptr.vmem [resolvable:$true] %s1612_s21 }
 0x1fe   : > { %s1840_s22 = scalar_lea.vmem %s1613_s21, 64  ;;  %p1847_p11 = scmp.lt.s32.totalorder %s1613_s21, %s1613_s21 }
 0x1ff   : > { %p1841_p6 = scmp.ne.s32.totalorder %s1613_s21, %s1840_s22  ;;  %p1848_p12 = scmp.lt.s32.totalorder %s1840_s22, %s1840_s22 }
 0x201   : > { %p1842_p8 = pnand %p1841_p6, %p2604_p5  ;;  %p1849_p0 = por %p1848_p12, %p1847_p11 }
 0x203   : > { %p1843_p9 = pneg %p1842_p8 }
 0x205   : > { %p1850_p1 = pnand %p1849_p0, %p1843_p9 }
 0x207   : > { %1853 = shalt.err (!%p1850_p1)
}
 0x208   : > { %s1854_s12 = scalar_lea.hbm %s2649_s1, 64 }
 0x209   : > { %p1855_p13 = scmp.ne.s32.totalorder %s2649_s1, %s1854_s12  ;;  %p1860_p10 = scmp.lt.u32.totalorder %s1854_s12, %s2649_s1 }
 0x20b   : > { %p1856_p2 = pnand %p1855_p13, %p2604_p5 }
 0x20d   : > { %p1857_p3 = pneg %p1856_p2 }
 0x20f   : > { %p1862_p4 = pnand %p1860_p10, %p1857_p3 }
 0x211   : > { %1865 = shalt.err (!%p1862_p4)
}
 0x212   : > { %s1929_s14 = smov 32   ;;  %s1930_s15 = smov 2  }
 0x213   : > { %1711 = dma.vmem_to_hbm [thread:$0]  (%p2604_p5), %s1613_s21, 64, %s2649_s1, [#allocation6], %s1929_s14, %s1929_s14, %s1930_s15  }
 0x214   : > { %1895 = dma.done.wait (%p2604_p5), [#allocation6], 64  }
 0x215   : > { %1897 = vsyncadd (%p2604_p5), [#allocation6], 4294967232 }
 0x216 PF: > { %s15_s11 = sadd.s32 1, %s1920_s11   ;;  %s2652_s6 = smov %s1904_s7 }
 0x217   : > { %p12_p7 = scmp.ge.s32.totalorder %s15_s11, 4   ;;  %s2653_s7 = smov %s1908_s8 }
 0x218   : > { %s2654_s8 = smov %s1987_s17  ;;  %s2655_s9 = smov %s1916_s10 }
 0x219   : > { %s2656_s10 = smov %s2658_s13  ;;  %14 = sbr.rel (!%p12_p7) target bundleno = 5 (0x5), region = 74 }
 0x220   :  { %1628 = vsyncpa [#allocation5], 1 }
 0x221   :  { %1630 = vsyncpa [#allocation5 + $0x1], 1 }
 0x222   :  { %1631 = vsyncpa [#allocation6], 1 }
 0x223   :  { %1633 = vsyncpa [#allocation6 + $0x1], 1 }

</bundles_post_ra>
